<compile_context>
chip_gen: v5e
topology: v5e:2x2
jax: 0.10.0
libtpu: 0.0.40
codegen_flags: <defaults>
</compile_context>

<pallas_src>
import jax
import jax.numpy as jnp
from jax.experimental import pallas as pl
from jax.experimental.pallas import tpu as pltpu

_MiB = 1 << 20


def _round_up(x, m):
    return ((x + m - 1) // m) * m


def _vmem_capacity_bytes():
    """Per-core VMEM capacity; conservative 64 MiB fallback (works on every chip)."""
    try:
        return int(pltpu.get_tpu_info().vmem_capacity_bytes)
    except Exception:
        return 64 * _MiB


def _vmem_footprint(tm, tk, H, O_pad, out_bytes, use_scratch):
    """Rough double-buffered VMEM footprint of one grid step."""
    f = (2 * tm * H * 4              # x tile (f32, double-buffered)
         + 2 * H * tk * 2            # w1 slice (bf16)
         + 2 * tk * O_pad * 2        # w2 slice (bf16)
         + 2 * (tk + O_pad) * 4      # bias slices (f32)
         + 2 * tm * O_pad * out_bytes  # output block
         + tm * tk * 6)              # ReLU intermediate (f32 + bf16 copy)
    if use_scratch:
        f += tm * O_pad * 4
    return f


# ----------------------------------------------------------------------------- kernels

def _ffn_kernel_f32_out(x_ref, w1_ref, b1_ref, w2_ref, b2_ref, o_ref):
    """dense1 -> ReLU -> (dropout = identity) -> dense2.

    The output BlockSpec is k-invariant, so the (tm, O_pad) f32 output block stays
    VMEM-resident across the reduction sweep and serves as the accumulator
    (no separate scratch)."""
    k = pl.program_id(1)

    @pl.when(k == 0)
    def _():
        o_ref[...] = jnp.zeros_like(o_ref)

    # Cast activations to bf16 on the VPU (slack under the MXU); f32 accumulation.
    h = jnp.dot(x_ref[...].astype(jnp.bfloat16), w1_ref[...],
                preferred_element_type=jnp.float32)
    h = jnp.maximum(h + b1_ref[...], 0.0)
    # dropout -> identity (eval mode)
    o_ref[...] += jnp.dot(h.astype(w2_ref.dtype), w2_ref[...],
                          preferred_element_type=jnp.float32)

    @pl.when(k == pl.num_programs(1) - 1)
    def _():
        o_ref[...] += b2_ref[...]


def _ffn_kernel_cast_out(x_ref, w1_ref, b1_ref, w2_ref, b2_ref, o_ref, acc_ref):
    """Variant with an f32 scratch accumulator for narrow output dtypes (e.g. bf16)."""
    k = pl.program_id(1)

    @pl.when(k == 0)
    def _():
        acc_ref[...] = jnp.zeros_like(acc_ref)

    h = jnp.dot(x_ref[...].astype(jnp.bfloat16), w1_ref[...],
                preferred_element_type=jnp.float32)
    h = jnp.maximum(h + b1_ref[...], 0.0)
    acc_ref[...] += jnp.dot(h.astype(w2_ref.dtype), w2_ref[...],
                            preferred_element_type=jnp.float32)

    @pl.when(k == pl.num_programs(1) - 1)
    def _():
        o_ref[...] = (acc_ref[...] + b2_ref[...]).astype(o_ref.dtype)


# ------------------------------------------------------------------- config & params

def make_ffn_config(H, H2, O, *, out_dtype=jnp.float32):
    """One-time, generation-aware tile / VMEM configuration (independent of M)."""
    vmem_cap = _vmem_capacity_bytes()
    small_vmem = vmem_cap <= 80 * _MiB           # v7x: 64 MiB per TensorCore
    budget = (vmem_cap * 3) // 4                 # ~48 MiB v7x, ~96 MiB v5e/v6e
    margin = 8 * _MiB

    out_dtype = jnp.dtype(out_dtype)
    out_bytes = out_dtype.itemsize
    use_scratch = out_dtype != jnp.dtype(jnp.float32)

    O_pad = _round_up(O, 128)
    # v5e/v6e (128 MiB VMEM): bigger row tile ~doubles weight-stream intensity.
    tm_target = 256 if small_vmem else 512

    # tk: largest multiple of 128 in [256, min(512, H2_pad128)] that avoids padding H2;
    # otherwise fall back to 512 (padded).  Never below 256 (acc RMW amortization).
    h2r = _round_up(H2, 128)
    tk = min(512, h2r)
    for cand in range(min(512, h2r), 255, -128):
        if h2r % cand == 0:
            tk = cand
            break

    # On small-VMEM chips (v7x) trim tk toward 256 before touching tm.
    while (small_vmem and tk > 256 and
           _vmem_footprint(tm_target, tk, H, O_pad, out_bytes, use_scratch)
           + margin > budget):
        tk = max(256, _round_up(tk // 2, 128))

    return dict(H=H, H2=H2, O=O, O_pad=O_pad, H2_pad=_round_up(H2, tk),
                tk=tk, tm_target=tm_target, small_vmem=small_vmem,
                budget=int(budget), margin=int(margin),
                out_dtype=out_dtype, out_bytes=out_bytes, use_scratch=use_scratch)


def prepare_ffn_params(w1, b1, w2, b2, cfg):
    """One-time parameter preparation (bf16 cast + padding).  Call once, reuse across
    forward calls so the per-call path does not re-cast / re-pad static weights."""
    H2, O = cfg["H2"], cfg["O"]
    H2_pad, O_pad = cfg["H2_pad"], cfg["O_pad"]

    w1b = w1.astype(jnp.bfloat16)
    w2b = w2.astype(jnp.bfloat16)
    b1f = b1.astype(jnp.float32).reshape(1, H2)
    b2f = b2.astype(jnp.float32).reshape(1, O)

    if H2_pad != H2:
        w1b = jnp.pad(w1b, ((0, 0), (0, H2_pad - H2)))
        b1f = jnp.pad(b1f, ((0, 0), (0, H2_pad - H2)))
        w2b = jnp.pad(w2b, ((0, H2_pad - H2), (0, 0)))
    if O_pad != O:
        w2b = jnp.pad(w2b, ((0, 0), (0, O_pad - O)))
        b2f = jnp.pad(b2f, ((0, 0), (0, O_pad - O)))
    return w1b, b1f, w2b, b2f


# -------------------------------------------------------------------------- forward

def position_wise_ffn(x, prepared_params, cfg):
    """x: (B, S, H) float32; prepared_params from prepare_ffn_params.
    Returns (B, S, O) in cfg['out_dtype']."""
    B, S, H = x.shape
    assert H == cfg["H"]
    w1b, b1f, w2b, b2f = prepared_params
    tk, H2_pad, O_pad, O = cfg["tk"], cfg["H2_pad"], cfg["O_pad"], cfg["O"]
    out_dtype, out_bytes = cfg["out_dtype"], cfg["out_bytes"]
    use_scratch = cfg["use_scratch"]
    M = B * S

    # ---- row tile: multiple of 128 (MXU-height / sublane-pack friendly) ----
    m128 = _round_up(M, 128)
    tm = min(cfg["tm_target"], m128)
    # v7x has 2 TensorCores; keep >= 2 blocks on the parallel axis when M allows.
    if cfg["small_vmem"] and m128 >= 256 and tm >= m128:
        tm = _round_up((m128 + 1) // 2, 128)
    # Shrink tm (never below 128) rather than exceed the per-core VMEM budget.
    while tm > 128 and (_vmem_footprint(tm, tk, H, O_pad, out_bytes, use_scratch)
                        + cfg["margin"] > cfg["budget"]):
        tm = max(128, _round_up(tm // 2, 128))

    M_pad = _round_up(M, tm)
    x2d = x.reshape(M, H)                       # f32 in; cast to bf16 inside the kernel
    if M_pad != M:
        x2d = jnp.pad(x2d, ((0, M_pad - M), (0, 0)))

    grid = (M_pad // tm, H2_pad // tk)

    # Cost estimate: weights are re-streamed from HBM once per M tile.
    flops = 2 * M_pad * (H * H2_pad + H2_pad * O_pad)
    bytes_accessed = (x2d.size * x2d.dtype.itemsize
                      + grid[0] * (w1b.size * 2 + w2b.size * 2)
                      + b1f.size * 4 + b2f.size * 4
                      + M_pad * O_pad * out_bytes)
    cost = pl.CostEstimate(flops=int(flops), transcendentals=0,
                           bytes_accessed=int(bytes_accessed))

    footprint = _vmem_footprint(tm, tk, H, O_pad, out_bytes, use_scratch)
    # Always set the scoped limit (default is only 16 MiB on v5e / 32 MiB on v6e/v7x),
    # but never request more than the per-generation budget.
    vmem_limit = int(min(footprint + cfg["margin"], cfg["budget"]))

    in_specs = [
        pl.BlockSpec((tm, H), lambda i, k: (i, 0)),        # x row tile (k-invariant)
        pl.BlockSpec((H, tk), lambda i, k: (0, k)),        # w1 slice
        pl.BlockSpec((1, tk), lambda i, k: (0, k)),        # b1 slice
        pl.BlockSpec((tk, O_pad), lambda i, k: (k, 0)),    # w2 slice
        pl.BlockSpec((1, O_pad), lambda i, k: (0, 0)),     # b2 (full)
    ]
    out_spec = pl.BlockSpec((tm, O_pad), lambda i, k: (i, 0))

    if use_scratch:
        kernel = _ffn_kernel_cast_out
        scratch = [pltpu.VMEM((tm, O_pad), jnp.float32)]
    else:
        kernel = _ffn_kernel_f32_out            # accumulate directly into o_ref
        scratch = []

    out2d = pl.pallas_call(
        kernel,
        out_shape=jax.ShapeDtypeStruct((M_pad, O_pad), out_dtype),
        grid_spec=pltpu.PrefetchScalarGridSpec(
            num_scalar_prefetch=0,
            grid=grid,
            in_specs=in_specs,
            out_specs=out_spec,
            scratch_shapes=scratch,
        ),
        compiler_params=pltpu.CompilerParams(
            dimension_semantics=("parallel", "arbitrary"),
            vmem_limit_bytes=vmem_limit,
        ),
        cost_estimate=cost,
    )(x2d, w1b, b1f, w2b, b2f)

    return out2d[:M, :O].reshape(B, S, O)


def init_params(key, hidden_dim, outdim):
    """Deterministic init mirroring nn.Linear shapes (weights stored transposed)."""
    k1, k2, k3, k4 = jax.random.split(key, 4)
    h2 = hidden_dim * 2
    lim1 = 1.0 / (hidden_dim ** 0.5)
    lim2 = 1.0 / (h2 ** 0.5)
    w1 = jax.random.uniform(k1, (hidden_dim, h2), jnp.float32, -lim1, lim1)
    b1 = jax.random.uniform(k2, (h2,), jnp.float32, -lim1, lim1)
    w2 = jax.random.uniform(k3, (h2, outdim), jnp.float32, -lim2, lim2)
    b2 = jax.random.uniform(k4, (outdim,), jnp.float32, -lim2, lim2)
    return w1, b1, w2, b2


if __name__ == "__main__":
    # Small shapes consistent with the module: batch=2, seq=8, hidden=128, outdim=128
    B, S, H, O = 2, 8, 128, 128

    key = jax.random.PRNGKey(0)
    kx, kp = jax.random.split(key)
    x = jax.random.normal(kx, (B, S, H), dtype=jnp.float32)
    w1, b1, w2, b2 = init_params(kp, H, O)

    cfg = make_ffn_config(H, 2 * H, O, out_dtype=x.dtype)
    params = prepare_ffn_params(w1, b1, w2, b2, cfg)        # one-time weight prep
    params = jax.block_until_ready(params)

    out = position_wise_ffn(x, params, cfg)
    out = jax.block_until_ready(out)

    # Pure-JAX reference with the SAME roundings as the kernel (dropout = identity):
    # bf16 matmul operands (including the ReLU intermediate before dense2), f32 accum.
    xb = x.reshape(-1, H).astype(jnp.bfloat16).astype(jnp.float32)
    w1f = w1.astype(jnp.bfloat16).astype(jnp.float32)
    w2f = w2.astype(jnp.bfloat16).astype(jnp.float32)
    h_ref = jnp.maximum(xb @ w1f + b1, 0.0)
    h_ref = h_ref.astype(jnp.bfloat16).astype(jnp.float32)  # kernel feeds bf16 h to dense2
    ref = (h_ref @ w2f + b2).reshape(B, S, O)

    assert out.shape == (B, S, O)
    assert jnp.allclose(out, ref, atol=1e-2, rtol=1e-2), "mismatch vs reference"

    print("KERNEL_OK")
</pallas_src>

<mosaic_0001>
module attributes {stable_mosaic.version = 11 : i64} {
  func.func @_ffn_kernel_f32_out(%arg0: i32, %arg1: i32, %arg2: memref<128x128xf32, #tpu.memory_space<vmem>>, %arg3: memref<128x256xbf16, #tpu.memory_space<vmem>>, %arg4: memref<1x256xf32, #tpu.memory_space<vmem>>, %arg5: memref<256x128xbf16, #tpu.memory_space<vmem>>, %arg6: memref<1x128xf32, #tpu.memory_space<vmem>>, %arg7: memref<128x128xf32, #tpu.memory_space<vmem>>) attributes {dimension_semantics = [#tpu.dimension_semantics<parallel>, #tpu.dimension_semantics<arbitrary>], iteration_bounds = array<i64: 1, 1>, scalar_prefetch = 0 : i64, scratch_operands = 0 : i64, tpu.core_type = #tpu.core_type<tc>, window_params = [{transform_indices = @transform_0, window_bounds = array<i64: 128, 128>}, {transform_indices = @transform_1, window_bounds = array<i64: 128, 256>}, {transform_indices = @transform_2, window_bounds = array<i64: 1, 256>}, {transform_indices = @transform_3, window_bounds = array<i64: 256, 128>}, {pipeline_mode = #tpu.pipeline_mode<synchronous>, transform_indices = @transform_4, window_bounds = array<i64: 1, 128>}, {transform_indices = @transform_5, window_bounds = array<i64: 128, 128>}]} {
    %c0_i32 = arith.constant 0 : i32
    %0 = arith.cmpi eq, %arg1, %c0_i32 : i32
    %1 = arith.extui %0 : i1 to i32
    %c0_i32_0 = arith.constant 0 : i32
    %2 = arith.cmpi ne, %1, %c0_i32_0 : i32
    scf.if %2 {
      %cst_16 = arith.constant 0.000000e+00 : f32
      %21 = vector.broadcast %cst_16 : f32 to vector<128x128xf32>
      %c0_17 = arith.constant 0 : index
      %c0_18 = arith.constant 0 : index
      %22 = vector.load %arg7[%c0_17, %c0_18] : memref<128x128xf32, #tpu.memory_space<vmem>>, vector<128x128xf32>
      tpu.vector_store %arg7[%c0_17, %c0_18], %21 {strides = array<i32>} : memref<128x128xf32, #tpu.memory_space<vmem>>, vector<128x128xf32>,
    } else {
    }
    %c0 = arith.constant 0 : index
    %c0_1 = arith.constant 0 : index
    %3 = vector.load %arg2[%c0, %c0_1] : memref<128x128xf32, #tpu.memory_space<vmem>>, vector<128x128xf32>
    %4 = arith.truncf %3 : vector<128x128xf32> to vector<128x128xbf16>
    %c0_2 = arith.constant 0 : index
    %c0_3 = arith.constant 0 : index
    %5 = vector.load %arg3[%c0_2, %c0_3] : memref<128x256xbf16, #tpu.memory_space<vmem>>, vector<128x256xbf16>
    %cst = arith.constant dense<0.000000e+00> : vector<128x256xf32>
    %6 = tpu.matmul %4, %5, %cst {dimension_numbers = #tpu.dot_dimension_numbers<[1], [0], [0], [1], [0, 0, 1, 1], [], []>} : vector<128x128xbf16>, vector<128x256xbf16>, vector<128x256xf32> -> vector<128x256xf32>
    %c0_4 = arith.constant 0 : index
    %c0_5 = arith.constant 0 : index
    %7 = vector.load %arg4[%c0_4, %c0_5] : memref<1x256xf32, #tpu.memory_space<vmem>>, vector<1x256xf32>
    %8 = vector.broadcast %7 : vector<1x256xf32> to vector<128x256xf32>
    %9 = arith.addf %6, %8 : vector<128x256xf32>
    %cst_6 = arith.constant 0.000000e+00 : f32
    %10 = vector.broadcast %cst_6 : f32 to vector<128x256xf32>
    %11 = arith.maximumf %9, %10 : vector<128x256xf32>
    %c0_7 = arith.constant 0 : index
    %c0_8 = arith.constant 0 : index
    %12 = vector.load %arg7[%c0_7, %c0_8] : memref<128x128xf32, #tpu.memory_space<vmem>>, vector<128x128xf32>
    %13 = arith.truncf %11 : vector<128x256xf32> to vector<128x256xbf16>
    %c0_9 = arith.constant 0 : index
    %c0_10 = arith.constant 0 : index
    %14 = vector.load %arg5[%c0_9, %c0_10] : memref<256x128xbf16, #tpu.memory_space<vmem>>, vector<256x128xbf16>
    %cst_11 = arith.constant dense<0.000000e+00> : vector<128x128xf32>
    %15 = tpu.matmul %13, %14, %cst_11 {dimension_numbers = #tpu.dot_dimension_numbers<[1], [0], [0], [1], [0, 0, 1, 1], [], []>} : vector<128x256xbf16>, vector<256x128xbf16>, vector<128x128xf32> -> vector<128x128xf32>
    %16 = arith.addf %12, %15 : vector<128x128xf32>
    %c0_12 = arith.constant 0 : index
    %c0_13 = arith.constant 0 : index
    %17 = vector.load %arg7[%c0_12, %c0_13] : memref<128x128xf32, #tpu.memory_space<vmem>>, vector<128x128xf32>
    tpu.vector_store %arg7[%c0_12, %c0_13], %16 {strides = array<i32>} : memref<128x128xf32, #tpu.memory_space<vmem>>, vector<128x128xf32>,
    %c0_i32_14 = arith.constant 0 : i32
    %18 = arith.cmpi eq, %arg1, %c0_i32_14 : i32
    %19 = arith.extui %18 : i1 to i32
    %c0_i32_15 = arith.constant 0 : i32
    %20 = arith.cmpi ne, %19, %c0_i32_15 : i32
    scf.if %20 {
      %c0_16 = arith.constant 0 : index
      %c0_17 = arith.constant 0 : index
      %21 = vector.load %arg7[%c0_16, %c0_17] : memref<128x128xf32, #tpu.memory_space<vmem>>, vector<128x128xf32>
      %c0_18 = arith.constant 0 : index
      %c0_19 = arith.constant 0 : index
      %22 = vector.load %arg6[%c0_18, %c0_19] : memref<1x128xf32, #tpu.memory_space<vmem>>, vector<1x128xf32>
      %23 = vector.broadcast %22 : vector<1x128xf32> to vector<128x128xf32>
      %24 = arith.addf %21, %23 : vector<128x128xf32>
      %c0_20 = arith.constant 0 : index
      %c0_21 = arith.constant 0 : index
      %25 = vector.load %arg7[%c0_20, %c0_21] : memref<128x128xf32, #tpu.memory_space<vmem>>, vector<128x128xf32>
      tpu.vector_store %arg7[%c0_20, %c0_21], %24 {strides = array<i32>} : memref<128x128xf32, #tpu.memory_space<vmem>>, vector<128x128xf32>,
    } else {
    }
    return
  }
  func.func @transform_0(%arg0: i32, %arg1: i32) -> (i32, i32) {
    %c0_i32 = arith.constant 0 : i32
    %c0_i32_0 = arith.constant 0 : i32
    return %arg0, %c0_i32 : i32, i32
  }
  func.func @transform_1(%arg0: i32, %arg1: i32) -> (i32, i32) {
    %c0_i32 = arith.constant 0 : i32
    %c0_i32_0 = arith.constant 0 : i32
    return %c0_i32, %arg1 : i32, i32
  }
  func.func @transform_2(%arg0: i32, %arg1: i32) -> (i32, i32) {
    %c0_i32 = arith.constant 0 : i32
    %c0_i32_0 = arith.constant 0 : i32
    return %c0_i32, %arg1 : i32, i32
  }
  func.func @transform_3(%arg0: i32, %arg1: i32) -> (i32, i32) {
    %c0_i32 = arith.constant 0 : i32
    %c0_i32_0 = arith.constant 0 : i32
    return %arg1, %c0_i32 : i32, i32
  }
  func.func @transform_4(%arg0: i32, %arg1: i32) -> (i32, i32) {
    %c0_i32 = arith.constant 0 : i32
    %c0_i32_0 = arith.constant 0 : i32
    %c0_i32_1 = arith.constant 0 : i32
    return %c0_i32, %c0_i32_0 : i32, i32
  }
  func.func @transform_5(%arg0: i32, %arg1: i32) -> (i32, i32) {
    %c0_i32 = arith.constant 0 : i32
    %c0_i32_0 = arith.constant 0 : i32
    return %arg0, %c0_i32 : i32, i32
  }
}

</mosaic_0001>

<bundles_post_ra>
// kernel: tpu_custom_call.1
= control target key start
LH: loop header
LB: loop body
LE: loop exit
PB: predicated region body
PF: predicated region fallthrough
CT: control target
= control target key end

     0   :  { %10 = vsyncpa [#allocation3], 0  ;;  %s1143_s0 = inlined_call_operand.hbm [shape: f32[128,128], index: 0, kind: input, shape index: {}]   ;;  %s1144_s1 = inlined_call_operand.hbm [shape: bf16[128,256], index: 1, kind: input, shape index: {}]   ;;  %s1145_s2 = inlined_call_operand.hbm [shape: f32[1,256], index: 2, kind: input, shape index: {}]   ;;  %s1146_s3 = inlined_call_operand.hbm [shape: bf16[256,128], index: 3, kind: input, shape index: {}]   ;;  %s1147_s4 = inlined_call_operand.vmem [shape: f32[1,128], index: 4, kind: input, shape index: {}]   ;;  %s1148_s5 = inlined_call_operand.hbm [shape: f32[128,128], index: 5, kind: output, shape index: {}]  }
   0x1   :  { %11 = vsyncpa [#allocation6], 0 }
   0x2   :  { %12 = vsyncpa [#allocation9], 0 }
   0x3   :  { %13 = vsyncpa [#allocation4], 0  ;;  %s31_s20 = sshll.u32 %s1144_s1, 4  ;;  %s1023_s21 = smov [#allocation5]   ;;  %s32_s20 = int_to_ptr.hbm [resolvable:$true] %s31_s20 }
   0x4   :  { %s33_s22 = sshll.u32 %s1023_s21, 4  ;;  %s18_s25 = sshll.u32 %s1143_s0, 4  ;;  %s34_s22 = int_to_ptr.vmem [resolvable:$true] %s33_s22  ;;  %s19_s25 = int_to_ptr.hbm [resolvable:$true] %s18_s25 }
   0x5   :  { %s1024_s26 = smov 128   ;;  %s1025_s27 = smov 8  }
   0x6   :  { %39 = dma.hbm_to_vmem [thread:$0]  %s32_s20, 2048, %s34_s22, [#allocation6], %s1024_s26, %s1024_s26, %s1025_s27  }
   0x7   :  { %s1026_s28 = smov [#allocation2]   ;;  %s45_s1 = sshll.u32 %s1145_s2, 4  ;;  %s46_s1 = int_to_ptr.hbm [resolvable:$true] %s45_s1 }
   0x8   :  { %s20_s29 = sshll.u32 %s1026_s28, 4  ;;  %s55_s8 = sshll.u32 %s1146_s3, 4  ;;  %s21_s29 = int_to_ptr.vmem [resolvable:$true] %s20_s29  ;;  %s56_s8 = int_to_ptr.hbm [resolvable:$true] %s55_s8 }
   0x9   :  { %26 = dma.hbm_to_vmem [thread:$0]  %s19_s25, 2048, %s21_s29, [#allocation3], %s1024_s26, %s1024_s26, %s1025_s27  }
   0xa   :  { %s1027_s9 = smov [#allocation7]   ;;  %s1028_s11 = smov [#allocation8]  }
   0xb   :  { %s47_s10 = sshll.u32 %s1027_s9, 4  ;;  %s57_s12 = sshll.u32 %s1028_s11, 4  ;;  %s48_s10 = int_to_ptr.vmem [resolvable:$true] %s47_s10  ;;  %s58_s12 = int_to_ptr.vmem [resolvable:$true] %s57_s12 }
   0xc   :  { %50 = dma.hbm_to_vmem [thread:$0]  %s46_s1, 32, %s48_s10, [#allocation6]  }
   0xd   :  { %s1029_s13 = smov 64   ;;  %s1030_s2 = smov 4  }
   0xe   :  { %63 = dma.hbm_to_vmem [thread:$0]  %s56_s8, 2048, %s58_s12, [#allocation9], %s1029_s13, %s1029_s13, %s1030_s2  }
   0xf   :  { %1015 = dma.done.wait [#allocation3], 2048  }
  0x10   :  { %1016 = vsyncadd [#allocation3], 4294965248 }
  0x11   :  { %1017 = dma.done.wait [#allocation6], 2080  }
  0x12   :  { %1018 = vsyncadd [#allocation6], 4294965216 }
  0x13   :  { %1019 = dma.done.wait [#allocation9], 2048  }
  0x14   :  { %1020 = vsyncadd [#allocation9], 4294965248  ;;  %v782_v0 = vld [vmem:[#allocation5 + $0x70] sm:$0xf]  ;;  %v867_v1 = vld [vmem:[#allocation5 + $0x74] sm:$0xf0] }
  0x15   :  { %v866_v2 = vld [vmem:[#allocation5 + $0x74] sm:$0xf]  ;;  %v783_v3 = vor.u32 %v867_v1, %v782_v0  ;;  %v784_v4 = vld [vmem:[#allocation5 + $0x78] sm:$0xf0]  ;;  %v774_v5 = vld [vmem:[#allocation5 + $0x60] sm:$0xf] }
  0x16   :  { %v865_v6 = vld [vmem:[#allocation5 + $0x64] sm:$0xf0]  ;;  %v787_v7 = vor.u32 %v866_v2, %v784_v4  ;;  %v864_v8 = vld [vmem:[#allocation5 + $0x64] sm:$0xf]  ;;  %v776_v9 = vld [vmem:[#allocation5 + $0x68] sm:$0xf0] }
  0x17   :  { %228 = vmatpush.bf16.msra.mxu0 %v783_v3  ;;  %v775_v10 = vor.u32 %v865_v6, %v774_v5  ;;  %v779_v11 = vor.u32 %v864_v8, %v776_v9  ;;  %v766_v12 = vld [vmem:[#allocation5 + $0x50] sm:$0xf]  ;;  %v863_v13 = vld [vmem:[#allocation5 + $0x54] sm:$0xf0]  ;;  %v862_v14 = vld [vmem:[#allocation5 + $0x54] sm:$0xf] }
  0x18   :  { %277 = vmatpush.bf16.msra.mxu1 %v787_v7  ;;  %v768_v15 = vld [vmem:[#allocation5 + $0x58] sm:$0xf0]  ;;  %v767_v16 = vor.u32 %v863_v13, %v766_v12  ;;  %v758_v18 = vld [vmem:[#allocation5 + $0x40] sm:$0xf]  ;;  %v861_v19 = vld [vmem:[#allocation5 + $0x44] sm:$0xf0] }
  0x19   :  { %v771_v17 = vor.u32 %v862_v14, %v768_v15  ;;  %v860_v20 = vld [vmem:[#allocation5 + $0x44] sm:$0xf]  ;;  %v760_v21 = vld [vmem:[#allocation5 + $0x48] sm:$0xf0]  ;;  %v759_v22 = vor.u32 %v861_v19, %v758_v18  ;;  %v750_v24 = vld [vmem:[#allocation5 + $0x30] sm:$0xf] }
  0x1a   :  { %v763_v23 = vor.u32 %v860_v20, %v760_v21  ;;  %v859_v25 = vld [vmem:[#allocation5 + $0x34] sm:$0xf0]  ;;  %v858_v26 = vld [vmem:[#allocation5 + $0x34] sm:$0xf]  ;;  %v752_v27 = vld [vmem:[#allocation5 + $0x38] sm:$0xf0] }
  0x1b   :  { %229 = vmatpush.bf16.msra.mxu0 %v775_v10  ;;  %v751_v28 = vor.u32 %v859_v25, %v750_v24  ;;  %v755_v29 = vor.u32 %v858_v26, %v752_v27  ;;  %v742_v30 = vld [vmem:[#allocation5 + $0x20] sm:$0xf]  ;;  %v857_v31 = vld [vmem:[#allocation5 + $0x24] sm:$0xf0]  ;;  %v856_v32 = vld [vmem:[#allocation5 + $0x24] sm:$0xf] }
  0x1c   :  { %278 = vmatpush.bf16.msra.mxu1 %v779_v11  ;;  %v744_v33 = vld [vmem:[#allocation5 + $0x28] sm:$0xf0]  ;;  %v743_v34 = vor.u32 %v857_v31, %v742_v30  ;;  %v734_v36 = vld [vmem:[#allocation5 + $0x10] sm:$0xf]  ;;  %v855_v37 = vld [vmem:[#allocation5 + $0x14] sm:$0xf0] }
  0x1d   :  { %v747_v35 = vor.u32 %v856_v32, %v744_v33  ;;  %v854_v38 = vld [vmem:[#allocation5 + $0x14] sm:$0xf]  ;;  %v736_v39 = vld [vmem:[#allocation5 + $0x18] sm:$0xf0]  ;;  %v735_v40 = vor.u32 %v855_v37, %v734_v36  ;;  %v726_v42 = vld [vmem:[#allocation5] sm:$0xf] }
  0x1e   :  { %v739_v41 = vor.u32 %v854_v38, %v736_v39  ;;  %v853_v43 = vld [vmem:[#allocation5 + $0x4] sm:$0xf0]  ;;  %v852_v44 = vld [vmem:[#allocation5 + $0x4] sm:$0xf]  ;;  %v728_v45 = vld [vmem:[#allocation5 + $0x8] sm:$0xf0] }
  0x1f   :  { %230 = vmatpush.bf16.msra.mxu0 %v767_v16  ;;  %v727_v46 = vor.u32 %v853_v43, %v726_v42  ;;  %v102_v47 = vld [vmem:[#allocation2] sm:$0xff]  ;;  %v103_v48 = vld [vmem:[#allocation2 + $0x8] sm:$0xff]  ;;  %v731_v49 = vor.u32 %v852_v44, %v728_v45  ;;  %v104_v51 = vld [vmem:[#allocation2 + $0x10] sm:$0xff]  ;;  %s709_s18 = sshll.u32 %s1148_s5, 4  ;;  %s710_s18 = int_to_ptr.hbm [resolvable:$true] %s709_s18 }
  0x20   :  { %279 = vmatpush.bf16.msra.mxu1 %v771_v17  ;;  %v118_v50 = vpack.c.bf16 %v103_v48, %v102_v47  ;;  %v105_v52 = vld [vmem:[#allocation2 + $0x18] sm:$0xff]  ;;  %v106_v54 = vld [vmem:[#allocation2 + $0x20] sm:$0xff]  ;;  %v107_v55 = vld [vmem:[#allocation2 + $0x28] sm:$0xff] }
  0x21   :  { %v119_v53 = vpack.c.bf16 %v105_v52, %v104_v51  ;;  %v120_v56 = vpack.c.bf16 %v107_v55, %v106_v54  ;;  %v108_v57 = vld [vmem:[#allocation2 + $0x30] sm:$0xff]  ;;  %v109_v58 = vld [vmem:[#allocation2 + $0x38] sm:$0xff]  ;;  %v110_v60 = vld [vmem:[#allocation2 + $0x40] sm:$0xff] }
  0x22   :  { %v121_v59 = vpack.c.bf16 %v109_v58, %v108_v57  ;;  %v111_v61 = vld [vmem:[#allocation2 + $0x48] sm:$0xff]  ;;  %v875_v63 = vld [vmem:[#allocation8 + $0x38] sm:$0xff]  ;;  %v112_v1 = vld [vmem:[#allocation2 + $0x50] sm:$0xff] }
  0x23   :  { %231 = vmatpush.bf16.msra.mxu0 %v759_v22  ;;  %v122_v62 = vpack.c.bf16 %v111_v61, %v110_v60  ;;  %v883_v0 = vld [vmem:[#allocation8 + $0x78] sm:$0xff]  ;;  %518 = vmatpush.bf16.msra.mxu2 %v875_v63  ;;  %v874_v4 = vld [vmem:[#allocation8 + $0x30] sm:$0xff]  ;;  %v873_v6 = vld [vmem:[#allocation8 + $0x28] sm:$0xff] }
  0x24   :  { %280 = vmatpush.bf16.msra.mxu1 %v763_v23  ;;  %567 = vmatpush.bf16.msra.mxu3 %v883_v0  ;;  %v113_v2 = vld [vmem:[#allocation2 + $0x58] sm:$0xff]  ;;  %v881_v7 = vld [vmem:[#allocation8 + $0x68] sm:$0xff]  ;;  %v872_v8 = vld [vmem:[#allocation8 + $0x20] sm:$0xff] }
  0x25   :  { %v123_v3 = vpack.c.bf16 %v113_v2, %v112_v1  ;;  %v882_v5 = vld [vmem:[#allocation8 + $0x70] sm:$0xff]  ;;  %v880_v9 = vld [vmem:[#allocation8 + $0x60] sm:$0xff]  ;;  %v871_v13 = vld [vmem:[#allocation8 + $0x18] sm:$0xff] }
  0x26   :  { %v114_v10 = vld [vmem:[#allocation2 + $0x60] sm:$0xff]  ;;  %v115_v11 = vld [vmem:[#allocation2 + $0x68] sm:$0xff]  ;;  %v870_v15 = vld [vmem:[#allocation8 + $0x10] sm:$0xff] }
  0x27   :  { %232 = vmatpush.bf16.msra.mxu0 %v751_v28  ;;  %519 = vmatpush.bf16.msra.mxu2 %v874_v4  ;;  %v124_v12 = vpack.c.bf16 %v115_v11, %v114_v10  ;;  %v879_v14 = vld [vmem:[#allocation8 + $0x58] sm:$0xff]  ;;  %v878_v16 = vld [vmem:[#allocation8 + $0x50] sm:$0xff]  ;;  %v869_v17 = vld [vmem:[#allocation8 + $0x8] sm:$0xff] }
  0x28   :  { %281 = vmatpush.bf16.msra.mxu1 %v755_v29  ;;  %568 = vmatpush.bf16.msra.mxu3 %v882_v5  ;;  %v877_v18 = vld [vmem:[#allocation8 + $0x48] sm:$0xff]  ;;  %v868_v19 = vld [vmem:[#allocation8] sm:$0xff]  ;;  %v117_v22 = vld [vmem:[#allocation2 + $0x78] sm:$0xff] }
  0x29   :  { %v876_v20 = vld [vmem:[#allocation8 + $0x40] sm:$0xff]  ;;  %v116_v21 = vld [vmem:[#allocation2 + $0x70] sm:$0xff]  ;;  %v142_v24 = vld [vmem:[#allocation7] sm:$0x3] }
  0x2a   :  { %v125_v23 = vpack.c.bf16 %v117_v22, %v116_v21  ;;  %v1080_v27 = vperm.slane %v142_v24, 0  ;;  %v1082_v28 = vperm.slane %v142_v24, 1 }
  0x2b   :  { %233 = vmatpush.bf16.msra.mxu0 %v743_v34  ;;  %520 = vmatpush.bf16.msra.mxu2 %v873_v6 }
  0x2c   :  { %282 = vmatpush.bf16.msra.mxu1 %v747_v35  ;;  %569 = vmatpush.bf16.msra.mxu3 %v881_v7 }
  0x2f   :  { %234 = vmatpush.bf16.msra.mxu0 %v735_v40  ;;  %521 = vmatpush.bf16.msra.mxu2 %v872_v8 }
  0x30   :  { %283 = vmatpush.bf16.msra.mxu1 %v739_v41  ;;  %570 = vmatpush.bf16.msra.mxu3 %v880_v9 }
  0x33   :  { %235 = vmatpush.bf16.msra.mxu0 %v727_v46  ;;  %522 = vmatpush.bf16.msra.mxu2 %v871_v13 }
  0x34   :  { %284 = vmatpush.bf16.msra.mxu1 %v731_v49  ;;  %571 = vmatpush.bf16.msra.mxu3 %v879_v14 }
  0x36   :  { %236 = vmatmul.bf16.vlgmr.msra.gmra.mxu0 %v118_v50 }
  0x37   :  { %285 = vmatmul.bf16.vlgmr.msra.gmra.mxu1 %v118_v50  ;;  %523 = vmatpush.bf16.msra.mxu2 %v870_v15 }
  0x38   :  { %572 = vmatpush.bf16.msra.mxu3 %v878_v16 }
  0x3b   :  { %524 = vmatpush.bf16.msra.mxu2 %v869_v17 }
  0x3c   :  { %573 = vmatpush.bf16.msra.mxu3 %v877_v18 }
  0x3f   :  { %525 = vmatpush.bf16.msra.mxu2 %v868_v19 }
  0x40   :  { %574 = vmatpush.bf16.msra.mxu3 %v876_v20 }
  0x46   :  { %241 = vmatmul.bf16.gmra.mxu0 %v119_v53 }
  0x47   :  { %290 = vmatmul.bf16.gmra.mxu1 %v119_v53 }
  0x56   :  { %246 = vmatmul.bf16.gmra.mxu0 %v120_v56 }
  0x57   :  { %295 = vmatmul.bf16.gmra.mxu1 %v120_v56 }
  0x66   :  { %251 = vmatmul.bf16.gmra.mxu0 %v121_v59 }
  0x67   :  { %300 = vmatmul.bf16.gmra.mxu1 %v121_v59 }
  0x76   :  { %256 = vmatmul.bf16.gmra.mxu0 %v122_v62 }
  0x77   :  { %305 = vmatmul.bf16.gmra.mxu1 %v122_v62 }
  0x86   :  { %261 = vmatmul.bf16.gmra.mxu0 %v123_v3 }
  0x87   :  { %310 = vmatmul.bf16.gmra.mxu1 %v123_v3 }
  0x96   :  { %266 = vmatmul.bf16.gmra.mxu0 %v124_v12 }
  0x97   :  { %315 = vmatmul.bf16.gmra.mxu1 %v124_v12 }
  0xa6   :  { %271 = vmatmul.bf16.gmra.mxu0 %v125_v23 }
  0xa7   :  { %320 = vmatmul.bf16.gmra.mxu1 %v125_v23 }
  0xb3   :  { %v237_v25 = vpop.f32.mrf.mxu0 }
  0xb4   :  { %v286_v26 = vpop.f32.mrf.mxu1  ;;  %v238_v29 = vadd.f32 %v237_v25, %v1080_v27 }
  0xb5   :  { %v287_v30 = vadd.f32 %v286_v26, %v1082_v28 }
  0xb6   :  { %v326_v35 = vmax.f32 %v238_v29, 0.0 }
  0xb7   :  { %v327_v37 = vmax.f32 %v287_v30, 0.0 }
  0xbb   :  { %v239_v31 = vpop.f32.mrf.mxu0 }
  0xbc   :  { %v240_v32 = vadd.f32 %v239_v31, %v1080_v27  ;;  %v288_v33 = vpop.f32.mrf.mxu1 }
  0xbd   :  { %v289_v34 = vadd.f32 %v288_v33, %v1082_v28 }
  0xbe   :  { %v328_v36 = vmax.f32 %v240_v32, 0.0 }
  0xbf   :  { %v329_v38 = vmax.f32 %v289_v34, 0.0 }
  0xc0   :  { %v374_v39 = vpack.c.bf16 %v328_v36, %v326_v35 }
  0xc1   :  { %v375_v40 = vpack.c.bf16 %v329_v38, %v327_v37 }
  0xc2   :  { %526 = vmatmul.bf16.vlgmr.msra.gmra.mxu2 %v374_v39 }
  0xc3   :  { %575 = vmatmul.bf16.vlgmr.msra.gmra.mxu3 %v375_v40  ;;  %v242_v41 = vpop.f32.mrf.mxu0 }
  0xc4   :  { %v291_v42 = vpop.f32.mrf.mxu1  ;;  %v243_v43 = vadd.f32 %v242_v41, %v1080_v27 }
  0xc5   :  { %v292_v44 = vadd.f32 %v291_v42, %v1082_v28 }
  0xc6   :  { %v330_v49 = vmax.f32 %v243_v43, 0.0 }
  0xc7   :  { %v331_v51 = vmax.f32 %v292_v44, 0.0 }
  0xcb   :  { %v244_v45 = vpop.f32.mrf.mxu0 }
  0xcc   :  { %v245_v46 = vadd.f32 %v244_v45, %v1080_v27  ;;  %v293_v47 = vpop.f32.mrf.mxu1 }
  0xcd   :  { %v294_v48 = vadd.f32 %v293_v47, %v1082_v28 }
  0xce   :  { %v332_v50 = vmax.f32 %v245_v46, 0.0 }
  0xcf   :  { %v333_v52 = vmax.f32 %v294_v48, 0.0 }
  0xd0   :  { %v376_v53 = vpack.c.bf16 %v332_v50, %v330_v49 }
  0xd1   :  { %v377_v54 = vpack.c.bf16 %v333_v52, %v331_v51 }
  0xd2   :  { %531 = vmatmul.bf16.gmra.mxu2 %v376_v53 }
  0xd3   :  { %580 = vmatmul.bf16.gmra.mxu3 %v377_v54  ;;  %v247_v55 = vpop.f32.mrf.mxu0 }
  0xd4   :  { %v296_v56 = vpop.f32.mrf.mxu1  ;;  %v248_v57 = vadd.f32 %v247_v55, %v1080_v27 }
  0xd5   :  { %v297_v58 = vadd.f32 %v296_v56, %v1082_v28 }
  0xd6   :  { %v334_v63 = vmax.f32 %v248_v57, 0.0 }
  0xd7   :  { %v335_v1 = vmax.f32 %v297_v58, 0.0 }
  0xdb   :  { %v249_v59 = vpop.f32.mrf.mxu0 }
  0xdc   :  { %v250_v60 = vadd.f32 %v249_v59, %v1080_v27  ;;  %v298_v61 = vpop.f32.mrf.mxu1 }
  0xdd   :  { %v299_v62 = vadd.f32 %v298_v61, %v1082_v28 }
  0xde   :  { %v336_v0 = vmax.f32 %v250_v60, 0.0 }
  0xdf   :  { %v337_v2 = vmax.f32 %v299_v62, 0.0 }
  0xe0   :  { %v378_v3 = vpack.c.bf16 %v336_v0, %v334_v63 }
  0xe1   :  { %v379_v4 = vpack.c.bf16 %v337_v2, %v335_v1 }
  0xe2   :  { %536 = vmatmul.bf16.gmra.mxu2 %v378_v3 }
  0xe3   :  { %585 = vmatmul.bf16.gmra.mxu3 %v379_v4  ;;  %v252_v5 = vpop.f32.mrf.mxu0 }
  0xe4   :  { %v301_v6 = vpop.f32.mrf.mxu1  ;;  %v253_v7 = vadd.f32 %v252_v5, %v1080_v27 }
  0xe5   :  { %v302_v8 = vadd.f32 %v301_v6, %v1082_v28 }
  0xe6   :  { %v338_v13 = vmax.f32 %v253_v7, 0.0 }
  0xe7   :  { %v339_v15 = vmax.f32 %v302_v8, 0.0 }
  0xeb   :  { %v254_v9 = vpop.f32.mrf.mxu0 }
  0xec   :  { %v255_v10 = vadd.f32 %v254_v9, %v1080_v27  ;;  %v303_v11 = vpop.f32.mrf.mxu1 }
  0xed   :  { %v304_v12 = vadd.f32 %v303_v11, %v1082_v28 }
  0xee   :  { %v340_v14 = vmax.f32 %v255_v10, 0.0 }
  0xef   :  { %v341_v16 = vmax.f32 %v304_v12, 0.0 }
  0xf0   :  { %v380_v17 = vpack.c.bf16 %v340_v14, %v338_v13 }
  0xf1   :  { %v381_v18 = vpack.c.bf16 %v341_v16, %v339_v15  ;;  %v1119_v16 = vld [vmem:[%s1147_s4] ss:$0 sm:$0xff]  ;;  %s1031_s4 = smov [#allocation10]  }
  0xf2   :  { %541 = vmatmul.bf16.gmra.mxu2 %v380_v17  ;;  %s707_s15 = sshll.u32 %s1031_s4, 4  ;;  %s708_s15 = int_to_ptr.vmem [resolvable:$true] %s707_s15 }
  0xf3   :  { %590 = vmatmul.bf16.gmra.mxu3 %v381_v18  ;;  %v257_v19 = vpop.f32.mrf.mxu0 }
  0xf4   :  { %v306_v20 = vpop.f32.mrf.mxu1  ;;  %v258_v21 = vadd.f32 %v257_v19, %v1080_v27 }
  0xf5   :  { %v307_v22 = vadd.f32 %v306_v20, %v1082_v28 }
  0xf6   :  { %v342_v29 = vmax.f32 %v258_v21, 0.0 }
  0xf7   :  { %v343_v31 = vmax.f32 %v307_v22, 0.0 }
  0xfb   :  { %v259_v23 = vpop.f32.mrf.mxu0 }
  0xfc   :  { %v260_v24 = vadd.f32 %v259_v23, %v1080_v27  ;;  %v308_v25 = vpop.f32.mrf.mxu1 }
  0xfd   :  { %v309_v26 = vadd.f32 %v308_v25, %v1082_v28 }
  0xfe   :  { %v344_v30 = vmax.f32 %v260_v24, 0.0 }
  0xff   :  { %v345_v32 = vmax.f32 %v309_v26, 0.0 }
 0x100   :  { %v382_v33 = vpack.c.bf16 %v344_v30, %v342_v29 }
 0x101   :  { %v383_v34 = vpack.c.bf16 %v345_v32, %v343_v31 }
 0x102   :  { %546 = vmatmul.bf16.gmra.mxu2 %v382_v33 }
 0x103   :  { %595 = vmatmul.bf16.gmra.mxu3 %v383_v34  ;;  %v262_v35 = vpop.f32.mrf.mxu0 }
 0x104   :  { %v311_v36 = vpop.f32.mrf.mxu1  ;;  %v263_v37 = vadd.f32 %v262_v35, %v1080_v27 }
 0x105   :  { %v312_v38 = vadd.f32 %v311_v36, %v1082_v28 }
 0x106   :  { %v346_v43 = vmax.f32 %v263_v37, 0.0 }
 0x107   :  { %v347_v45 = vmax.f32 %v312_v38, 0.0 }
 0x10b   :  { %v264_v39 = vpop.f32.mrf.mxu0 }
 0x10c   :  { %v265_v40 = vadd.f32 %v264_v39, %v1080_v27  ;;  %v313_v41 = vpop.f32.mrf.mxu1 }
 0x10d   :  { %v314_v42 = vadd.f32 %v313_v41, %v1082_v28 }
 0x10e   :  { %v348_v44 = vmax.f32 %v265_v40, 0.0 }
 0x10f   :  { %v349_v46 = vmax.f32 %v314_v42, 0.0 }
 0x110   :  { %v384_v47 = vpack.c.bf16 %v348_v44, %v346_v43 }
 0x111   :  { %v385_v48 = vpack.c.bf16 %v349_v46, %v347_v45 }
 0x112   :  { %551 = vmatmul.bf16.gmra.mxu2 %v384_v47 }
 0x113   :  { %600 = vmatmul.bf16.gmra.mxu3 %v385_v48  ;;  %v267_v49 = vpop.f32.mrf.mxu0 }
 0x114   :  { %v316_v50 = vpop.f32.mrf.mxu1  ;;  %v268_v51 = vadd.f32 %v267_v49, %v1080_v27 }
 0x115   :  { %v317_v52 = vadd.f32 %v316_v50, %v1082_v28 }
 0x116   :  { %v350_v57 = vmax.f32 %v268_v51, 0.0 }
 0x117   :  { %v351_v59 = vmax.f32 %v317_v52, 0.0 }
 0x11b   :  { %v269_v53 = vpop.f32.mrf.mxu0 }
 0x11c   :  { %v270_v54 = vadd.f32 %v269_v53, %v1080_v27  ;;  %v318_v55 = vpop.f32.mrf.mxu1 }
 0x11d   :  { %v319_v56 = vadd.f32 %v318_v55, %v1082_v28 }
 0x11e   :  { %v352_v58 = vmax.f32 %v270_v54, 0.0 }
 0x11f   :  { %v353_v60 = vmax.f32 %v319_v56, 0.0 }
 0x120   :  { %v386_v61 = vpack.c.bf16 %v352_v58, %v350_v57 }
 0x121   :  { %v387_v62 = vpack.c.bf16 %v353_v60, %v351_v59 }
 0x122   :  { %556 = vmatmul.bf16.gmra.mxu2 %v386_v61 }
 0x123   :  { %605 = vmatmul.bf16.gmra.mxu3 %v387_v62  ;;  %v272_v63 = vpop.f32.mrf.mxu0 }
 0x124   :  { %v321_v0 = vpop.f32.mrf.mxu1  ;;  %v273_v1 = vadd.f32 %v272_v63, %v1080_v27 }
 0x125   :  { %v322_v2 = vadd.f32 %v321_v0, %v1082_v28 }
 0x126   :  { %v354_v7 = vmax.f32 %v273_v1, 0.0 }
 0x127   :  { %v355_v9 = vmax.f32 %v322_v2, 0.0 }
 0x12b   :  { %v274_v3 = vpop.f32.mrf.mxu0 }
 0x12c   :  { %v275_v4 = vadd.f32 %v274_v3, %v1080_v27  ;;  %v323_v5 = vpop.f32.mrf.mxu1 }
 0x12d   :  { %v324_v6 = vadd.f32 %v323_v5, %v1082_v28 }
 0x12e   :  { %v356_v8 = vmax.f32 %v275_v4, 0.0 }
 0x12f   :  { %v357_v10 = vmax.f32 %v324_v6, 0.0 }
 0x130   :  { %v388_v11 = vpack.c.bf16 %v356_v8, %v354_v7 }
 0x131   :  { %v389_v12 = vpack.c.bf16 %v357_v10, %v355_v9 }
 0x132   :  { %561 = vmatmul.bf16.gmra.mxu2 %v388_v11 }
 0x133   :  { %610 = vmatmul.bf16.gmra.mxu3 %v389_v12 }
 0x145   :  { %v527_v13 = vpop.f32.mrf.mxu2 }
 0x146   :  { %v576_v14 = vpop.f32.mrf.mxu3 }
 0x147   :  { %v577_v15 = vadd.f32 %v576_v14, %v527_v13 }
 0x149   :  { %v671_v27 = vadd.f32 %v1119_v16, %v577_v15 }
 0x14b   :  { %687 = vst [vmem:[#allocation10] sm:$0xff] %v671_v27 }
 0x14d   :  { %v529_v28 = vpop.f32.mrf.mxu2 }
 0x14e   :  { %v578_v17 = vpop.f32.mrf.mxu3 }
 0x14f   :  { %v579_v18 = vadd.f32 %v578_v17, %v529_v28 }
 0x151   :  { %v672_v19 = vadd.f32 %v1119_v16, %v579_v18 }
 0x153   :  { %688 = vst [vmem:[#allocation10 + $0x8] sm:$0xff] %v672_v19 }
 0x155   :  { %v532_v20 = vpop.f32.mrf.mxu2 }
 0x156   :  { %v581_v21 = vpop.f32.mrf.mxu3 }
 0x157   :  { %v582_v22 = vadd.f32 %v581_v21, %v532_v20 }
 0x159   :  { %v673_v23 = vadd.f32 %v1119_v16, %v582_v22 }
 0x15b   :  { %689 = vst [vmem:[#allocation10 + $0x10] sm:$0xff] %v673_v23 }
 0x15d   :  { %v534_v24 = vpop.f32.mrf.mxu2 }
 0x15e   :  { %v583_v25 = vpop.f32.mrf.mxu3 }
 0x15f   :  { %v584_v26 = vadd.f32 %v583_v25, %v534_v24 }
 0x161   :  { %v674_v29 = vadd.f32 %v1119_v16, %v584_v26 }
 0x163   :  { %690 = vst [vmem:[#allocation10 + $0x18] sm:$0xff] %v674_v29 }
 0x165   :  { %v537_v30 = vpop.f32.mrf.mxu2 }
 0x166   :  { %v586_v31 = vpop.f32.mrf.mxu3 }
 0x167   :  { %v587_v32 = vadd.f32 %v586_v31, %v537_v30 }
 0x169   :  { %v675_v33 = vadd.f32 %v1119_v16, %v587_v32 }
 0x16b   :  { %691 = vst [vmem:[#allocation10 + $0x20] sm:$0xff] %v675_v33 }
 0x16d   :  { %v539_v34 = vpop.f32.mrf.mxu2 }
 0x16e   :  { %v588_v35 = vpop.f32.mrf.mxu3 }
 0x16f   :  { %v589_v36 = vadd.f32 %v588_v35, %v539_v34 }
 0x171   :  { %v676_v37 = vadd.f32 %v1119_v16, %v589_v36 }
 0x173   :  { %692 = vst [vmem:[#allocation10 + $0x28] sm:$0xff] %v676_v37 }
 0x175   :  { %v542_v38 = vpop.f32.mrf.mxu2 }
 0x176   :  { %v591_v39 = vpop.f32.mrf.mxu3 }
 0x177   :  { %v592_v40 = vadd.f32 %v591_v39, %v542_v38 }
 0x179   :  { %v677_v41 = vadd.f32 %v1119_v16, %v592_v40 }
 0x17b   :  { %693 = vst [vmem:[#allocation10 + $0x30] sm:$0xff] %v677_v41 }
 0x17d   :  { %v544_v42 = vpop.f32.mrf.mxu2 }
 0x17e   :  { %v593_v43 = vpop.f32.mrf.mxu3 }
 0x17f   :  { %v594_v44 = vadd.f32 %v593_v43, %v544_v42 }
 0x181   :  { %v678_v45 = vadd.f32 %v1119_v16, %v594_v44 }
 0x183   :  { %694 = vst [vmem:[#allocation10 + $0x38] sm:$0xff] %v678_v45 }
 0x185   :  { %v547_v46 = vpop.f32.mrf.mxu2 }
 0x186   :  { %v596_v47 = vpop.f32.mrf.mxu3 }
 0x187   :  { %v597_v48 = vadd.f32 %v596_v47, %v547_v46 }
 0x189   :  { %v679_v49 = vadd.f32 %v1119_v16, %v597_v48 }
 0x18b   :  { %695 = vst [vmem:[#allocation10 + $0x40] sm:$0xff] %v679_v49 }
 0x18d   :  { %v549_v50 = vpop.f32.mrf.mxu2 }
 0x18e   :  { %v598_v51 = vpop.f32.mrf.mxu3 }
 0x18f   :  { %v599_v52 = vadd.f32 %v598_v51, %v549_v50 }
 0x191   :  { %v680_v53 = vadd.f32 %v1119_v16, %v599_v52 }
 0x193   :  { %696 = vst [vmem:[#allocation10 + $0x48] sm:$0xff] %v680_v53 }
 0x195   :  { %v552_v54 = vpop.f32.mrf.mxu2 }
 0x196   :  { %v601_v55 = vpop.f32.mrf.mxu3 }
 0x197   :  { %v602_v56 = vadd.f32 %v601_v55, %v552_v54 }
 0x199   :  { %v681_v57 = vadd.f32 %v1119_v16, %v602_v56 }
 0x19b   :  { %697 = vst [vmem:[#allocation10 + $0x50] sm:$0xff] %v681_v57 }
 0x19d   :  { %v554_v58 = vpop.f32.mrf.mxu2 }
 0x19e   :  { %v603_v59 = vpop.f32.mrf.mxu3 }
 0x19f   :  { %v604_v60 = vadd.f32 %v603_v59, %v554_v58 }
 0x1a1   :  { %v682_v61 = vadd.f32 %v1119_v16, %v604_v60 }
 0x1a3   :  { %698 = vst [vmem:[#allocation10 + $0x58] sm:$0xff] %v682_v61 }
 0x1a5   :  { %v557_v62 = vpop.f32.mrf.mxu2 }
 0x1a6   :  { %v606_v63 = vpop.f32.mrf.mxu3 }
 0x1a7   :  { %v607_v0 = vadd.f32 %v606_v63, %v557_v62 }
 0x1a9   :  { %v683_v1 = vadd.f32 %v1119_v16, %v607_v0 }
 0x1ab   :  { %699 = vst [vmem:[#allocation10 + $0x60] sm:$0xff] %v683_v1 }
 0x1ad   :  { %v559_v2 = vpop.f32.mrf.mxu2 }
 0x1ae   :  { %v608_v3 = vpop.f32.mrf.mxu3 }
 0x1af   :  { %v609_v4 = vadd.f32 %v608_v3, %v559_v2 }
 0x1b1   :  { %v684_v5 = vadd.f32 %v1119_v16, %v609_v4 }
 0x1b3   :  { %700 = vst [vmem:[#allocation10 + $0x68] sm:$0xff] %v684_v5 }
 0x1b5   :  { %v562_v6 = vpop.f32.mrf.mxu2 }
 0x1b6   :  { %v611_v7 = vpop.f32.mrf.mxu3 }
 0x1b7   :  { %v612_v8 = vadd.f32 %v611_v7, %v562_v6 }
 0x1b9   :  { %v685_v9 = vadd.f32 %v1119_v16, %v612_v8 }
 0x1bb   :  { %701 = vst [vmem:[#allocation10 + $0x70] sm:$0xff] %v685_v9 }
 0x1bd   :  { %v564_v10 = vpop.f32.mrf.mxu2 }
 0x1be   :  { %v613_v11 = vpop.f32.mrf.mxu3 }
 0x1bf   :  { %v614_v12 = vadd.f32 %v613_v11, %v564_v10 }
 0x1c1   :  { %v686_v13 = vadd.f32 %v1119_v16, %v614_v12 }
 0x1c3   :  { %702 = vst [vmem:[#allocation10 + $0x78] sm:$0xff] %v686_v13 }
 0x1c4   :  { %715 = dma.vmem_to_hbm [thread:$0]  %s708_s15, 2048, %s710_s18, [#allocation4], %s1024_s26, %s1024_s26, %s1025_s27  }
 0x1c5   :  { %1021 = dma.done.wait [#allocation4], 2048  }
 0x1c6   :  { %1022 = vsyncadd [#allocation4], 4294965248 }
 0x1c7   :  { %720 = vsyncpa [#allocation3], 1 }
 0x1c8   :  { %721 = vsyncpa [#allocation6], 1 }
 0x1c9   :  { %722 = vsyncpa [#allocation9], 1 }
 0x1ca   :  { %723 = vsyncpa [#allocation4], 1 }

</bundles_post_ra>
